<compile_context>
chip_gen: v6e
topology: v6e:2x2x1
jax: 0.10.0
libtpu: 0.0.40
codegen_flags: <defaults>
</compile_context>

<pallas_src>
import jax
import jax.numpy as jnp
from jax.experimental import pallas as pl
from jax.experimental.pallas import tpu as pltpu

IN_FEATURES = 28 * 28   # 784
HIDDEN = 20
OUT = 10
H_PAD = 128             # hidden width padded to the 128-lane boundary
O_PAD = 128             # output width padded to the 128-lane boundary


def _round_up(n, m):
    return (n + m - 1) // m * m


def _mlp_kernel(x_ref, w1_ref, b1_ref, w2_ref, b2_ref, o_ref):
    # fc1: bf16 x bf16 on the MXU with f32 accumulation; bias add + tanh in f32.
    h = jnp.dot(x_ref[...], w1_ref[...], preferred_element_type=jnp.float32)
    h = jnp.tanh(h + b1_ref[...])                       # (TB, 128), lane-dense
    # fc2: f32 matmul; lane-dense 128-wide store (unmasked vst).
    out = jnp.dot(h, w2_ref[...], preferred_element_type=jnp.float32)
    o_ref[...] = out + b2_ref[...]


def net_mnist_msa_forward(x, w1, b1, w2, b2, *, block_b=1024):
    """x: (B, 1, 28, 28) or (B, 784). w1: (20, 784), b1: (20,), w2: (10, 20), b2: (10,)."""
    x2d = x.reshape(-1, IN_FEATURES).astype(jnp.float32)
    B = x2d.shape[0]

    # Batch tile: multiple of 16 (bf16 sublane packing), capped at block_b.
    TB = min(block_b, _round_up(B, 16))
    B_pad = _round_up(B, TB)
    if B_pad != B:
        x2d = jnp.pad(x2d, ((0, B_pad - B), (0, 0)))

    x_bf16 = x2d.astype(jnp.bfloat16)

    # Pre-transpose to (in, out) and zero-pad to lane-dense widths.
    w1_p = (jnp.zeros((IN_FEATURES, H_PAD), jnp.float32)
            .at[:, :HIDDEN].set(jnp.transpose(w1).astype(jnp.float32))
            .astype(jnp.bfloat16))                                   # (784, 128) bf16
    b1_p = jnp.zeros((1, H_PAD), jnp.float32).at[:, :HIDDEN].set(b1.astype(jnp.float32))
    w2_p = (jnp.zeros((H_PAD, O_PAD), jnp.float32)
            .at[:HIDDEN, :OUT].set(jnp.transpose(w2).astype(jnp.float32)))  # (128, 128) f32
    b2_p = jnp.zeros((1, O_PAD), jnp.float32).at[:, :OUT].set(b2.astype(jnp.float32))

    grid = (B_pad // TB,)

    out_padded = pl.pallas_call(
        _mlp_kernel,
        out_shape=jax.ShapeDtypeStruct((B_pad, O_PAD), jnp.float32),
        grid=grid,
        in_specs=[
            pl.BlockSpec((TB, IN_FEATURES), lambda i: (i, 0)),      # x tile: pipelined
            pl.BlockSpec((IN_FEATURES, H_PAD), lambda i: (0, 0)),   # W1: VMEM-resident
            pl.BlockSpec((1, H_PAD), lambda i: (0, 0)),             # b1
            pl.BlockSpec((H_PAD, O_PAD), lambda i: (0, 0)),         # W2
            pl.BlockSpec((1, O_PAD), lambda i: (0, 0)),             # b2
        ],
        out_specs=pl.BlockSpec((TB, O_PAD), lambda i: (i, 0)),
        compiler_params=pltpu.CompilerParams(
            dimension_semantics=("parallel",),     # megacore / v7x 2-TC sharding
            vmem_limit_bytes=32 * 1024 * 1024,     # safe on v5e/v6e/v7x
        ),
    )(x_bf16, w1_p, b1_p, w2_p, b2_p)

    return out_padded[:B, :OUT]


def init_params(key):
    """Deterministic parameter init with shapes from NetMNISTMSA.__init__."""
    k1, k2, k3, k4 = jax.random.split(key, 4)
    # fc1: Linear(784, 20); fc2: Linear(20, 10)  (PyTorch weight layout: (out, in))
    bound1 = 1.0 / jnp.sqrt(784.0)
    bound2 = 1.0 / jnp.sqrt(20.0)
    w1 = jax.random.uniform(k1, (20, 784), jnp.float32, -bound1, bound1)
    b1 = jax.random.uniform(k2, (20,), jnp.float32, -bound1, bound1)
    w2 = jax.random.uniform(k3, (10, 20), jnp.float32, -bound2, bound2)
    b2 = jax.random.uniform(k4, (10,), jnp.float32, -bound2, bound2)
    return w1, b1, w2, b2


if __name__ == "__main__":
    key = jax.random.PRNGKey(0)
    k_params, k_x = jax.random.split(key)

    w1, b1, w2, b2 = init_params(k_params)

    # Small MNIST-shaped batch: (B=2, C=1, H=28, W=28) in NCHW.
    x = jax.random.normal(k_x, (2, 1, 28, 28), jnp.float32)

    out = net_mnist_msa_forward(x, w1, b1, w2, b2)
    out = jax.block_until_ready(out)
    assert out.shape == (2, 10)

    x2d = x.reshape(-1, 784)
    # Matched-precision reference: bf16-quantized inputs to fc1, f32 elsewhere.
    xb = x2d.astype(jnp.bfloat16).astype(jnp.float32)
    w1b = w1.astype(jnp.bfloat16).astype(jnp.float32)
    ref_matched = jnp.tanh(xb @ w1b.T + b1) @ w2.T + b2
    # Full-precision PyTorch-equivalent reference (loose tolerance for bf16 inputs).
    ref_f32 = jnp.tanh(x2d @ w1.T + b1) @ w2.T + b2

    assert jnp.allclose(out, ref_matched, atol=2e-3, rtol=2e-3)
    assert jnp.allclose(out, ref_f32, atol=5e-2, rtol=5e-2)

    print("KERNEL_OK")
</pallas_src>

<mosaic_0001>
module attributes {stable_mosaic.version = 11 : i64} {
  func.func @_mlp_kernel(%arg0: i32, %arg1: memref<16x784xbf16, #tpu.memory_space<vmem>>, %arg2: memref<784x128xbf16, #tpu.memory_space<vmem>>, %arg3: memref<1x128xf32, #tpu.memory_space<vmem>>, %arg4: memref<128x128xf32, #tpu.memory_space<vmem>>, %arg5: memref<1x128xf32, #tpu.memory_space<vmem>>, %arg6: memref<16x128xf32, #tpu.memory_space<vmem>>) attributes {dimension_semantics = [#tpu.dimension_semantics<parallel>], iteration_bounds = array<i64: 1>, scalar_prefetch = 0 : i64, scratch_operands = 0 : i64, tpu.core_type = #tpu.core_type<tc>, window_params = [{transform_indices = @transform_0, window_bounds = array<i64: 16, 784>}, {pipeline_mode = #tpu.pipeline_mode<synchronous>, transform_indices = @transform_1, window_bounds = array<i64: 784, 128>}, {pipeline_mode = #tpu.pipeline_mode<synchronous>, transform_indices = @transform_2, window_bounds = array<i64: 1, 128>}, {pipeline_mode = #tpu.pipeline_mode<synchronous>, transform_indices = @transform_3, window_bounds = array<i64: 128, 128>}, {pipeline_mode = #tpu.pipeline_mode<synchronous>, transform_indices = @transform_4, window_bounds = array<i64: 1, 128>}, {transform_indices = @transform_5, window_bounds = array<i64: 16, 128>}]} {
    %c0 = arith.constant 0 : index
    %c0_0 = arith.constant 0 : index
    %0 = vector.load %arg1[%c0, %c0_0] : memref<16x784xbf16, #tpu.memory_space<vmem>>, vector<16x784xbf16>
    %c0_1 = arith.constant 0 : index
    %c0_2 = arith.constant 0 : index
    %1 = vector.load %arg2[%c0_1, %c0_2] : memref<784x128xbf16, #tpu.memory_space<vmem>>, vector<784x128xbf16>
    %cst = arith.constant dense<0.000000e+00> : vector<16x128xf32>
    %2 = tpu.matmul %0, %1, %cst {dimension_numbers = #tpu.dot_dimension_numbers<[1], [0], [0], [1], [0, 0, 1, 1], [], []>} : vector<16x784xbf16>, vector<784x128xbf16>, vector<16x128xf32> -> vector<16x128xf32>
    %c0_3 = arith.constant 0 : index
    %c0_4 = arith.constant 0 : index
    %3 = vector.load %arg3[%c0_3, %c0_4] : memref<1x128xf32, #tpu.memory_space<vmem>>, vector<1x128xf32>
    %4 = vector.broadcast %3 : vector<1x128xf32> to vector<16x128xf32>
    %5 = arith.addf %2, %4 : vector<16x128xf32>
    %6 = math.tanh %5 : vector<16x128xf32>
    %c0_5 = arith.constant 0 : index
    %c0_6 = arith.constant 0 : index
    %7 = vector.load %arg4[%c0_5, %c0_6] : memref<128x128xf32, #tpu.memory_space<vmem>>, vector<128x128xf32>
    %cst_7 = arith.constant dense<0.000000e+00> : vector<16x128xf32>
    %8 = tpu.matmul %6, %7, %cst_7 {dimension_numbers = #tpu.dot_dimension_numbers<[1], [0], [0], [1], [0, 0, 1, 1], [], []>} : vector<16x128xf32>, vector<128x128xf32>, vector<16x128xf32> -> vector<16x128xf32>
    %c0_8 = arith.constant 0 : index
    %c0_9 = arith.constant 0 : index
    %9 = vector.load %arg5[%c0_8, %c0_9] : memref<1x128xf32, #tpu.memory_space<vmem>>, vector<1x128xf32>
    %10 = vector.broadcast %9 : vector<1x128xf32> to vector<16x128xf32>
    %11 = arith.addf %8, %10 : vector<16x128xf32>
    %c0_10 = arith.constant 0 : index
    %c0_11 = arith.constant 0 : index
    %12 = vector.load %arg6[%c0_10, %c0_11] : memref<16x128xf32, #tpu.memory_space<vmem>>, vector<16x128xf32>
    tpu.vector_store %arg6[%c0_10, %c0_11], %11 {strides = array<i32>} : memref<16x128xf32, #tpu.memory_space<vmem>>, vector<16x128xf32>,
    return
  }
  func.func @transform_0(%arg0: i32) -> (i32, i32) {
    %c0_i32 = arith.constant 0 : i32
    %c0_i32_0 = arith.constant 0 : i32
    return %arg0, %c0_i32 : i32, i32
  }
  func.func @transform_1(%arg0: i32) -> (i32, i32) {
    %c0_i32 = arith.constant 0 : i32
    %c0_i32_0 = arith.constant 0 : i32
    %c0_i32_1 = arith.constant 0 : i32
    return %c0_i32, %c0_i32_0 : i32, i32
  }
  func.func @transform_2(%arg0: i32) -> (i32, i32) {
    %c0_i32 = arith.constant 0 : i32
    %c0_i32_0 = arith.constant 0 : i32
    %c0_i32_1 = arith.constant 0 : i32
    return %c0_i32, %c0_i32_0 : i32, i32
  }
  func.func @transform_3(%arg0: i32) -> (i32, i32) {
    %c0_i32 = arith.constant 0 : i32
    %c0_i32_0 = arith.constant 0 : i32
    %c0_i32_1 = arith.constant 0 : i32
    return %c0_i32, %c0_i32_0 : i32, i32
  }
  func.func @transform_4(%arg0: i32) -> (i32, i32) {
    %c0_i32 = arith.constant 0 : i32
    %c0_i32_0 = arith.constant 0 : i32
    %c0_i32_1 = arith.constant 0 : i32
    return %c0_i32, %c0_i32_0 : i32, i32
  }
  func.func @transform_5(%arg0: i32) -> (i32, i32) {
    %c0_i32 = arith.constant 0 : i32
    %c0_i32_0 = arith.constant 0 : i32
    return %arg0, %c0_i32 : i32, i32
  }
}

</mosaic_0001>

<bundles_post_ra>
// kernel: tpu_custom_call.1
= control target key start
LH: loop header
LB: loop body
LE: loop exit
PB: predicated region body
PF: predicated region fallthrough
CT: control target
= control target key end

     0   :  { %10 = vsyncpa [#allocation3], 0  ;;  %s1206_s0 = inlined_call_operand.hbm [shape: bf16[16,784], index: 0, kind: input, shape index: {}]   ;;  %s1207_s1 = inlined_call_operand.hbm [shape: bf16[784,128], index: 1, kind: input, shape index: {}]   ;;  %s1208_s2 = inlined_call_operand.vmem [shape: f32[1,128], index: 2, kind: input, shape index: {}]   ;;  %s1209_s3 = inlined_call_operand.hbm [shape: f32[128,128], index: 3, kind: input, shape index: {}]   ;;  %s1210_s4 = inlined_call_operand.vmem [shape: f32[1,128], index: 4, kind: input, shape index: {}]   ;;  %s1211_s5 = inlined_call_operand.hbm [shape: f32[16,128], index: 5, kind: output, shape index: {}]  }
   0x1   :  { %11 = vsyncpa [#allocation6], 0 }
   0x2   :  { %12 = vsyncpa [#allocation4], 0  ;;  %s1140_s18 = smov [#allocation5]  }
   0x3   :  { %s30_s19 = sshll.u32 %s1140_s18, 4  ;;  %s31_s19 = int_to_ptr.vmem [resolvable:$true] %s30_s19 }
   0x4   :  { %s1062_s20 = scalar_lea.vmem %s31_s19, 6272  ;;  %p1067_p1 = scmp.lt.s32.totalorder %s31_s19, %s31_s19 }
   0x5   :  { %p1063_p0 = scmp.ne.s32.totalorder %s31_s19, %s1062_s20  ;;  %p1068_p2 = scmp.lt.s32.totalorder %s1062_s20, %s1062_s20 }
   0x7   :  { %p1069_p3 = por %p1068_p2, %p1067_p1 }
   0x9   :  { %p1070_p4 = pnand %p1069_p3, %p1063_p0 }
   0xb   :  { %1073 = shalt.err (!%p1070_p4)
}
   0xc   :  { %s1141_s21 = smov 64   ;;  %s1142_s22 = smov 4  }
   0xd   :  { %36 = dma.hbm_to_vmem [thread:$0]  %s1207_s1, 6272, %s31_s19, [#allocation6], %s1141_s21, %s1141_s21, %s1142_s22  }
   0xe   :  { %s1143_s25 = smov [#allocation2]  }
   0xf   :  { %s18_s26 = sshll.u32 %s1143_s25, 4  ;;  %s19_s26 = int_to_ptr.vmem [resolvable:$true] %s18_s26 }
  0x10   :  { %s1082_s27 = scalar_lea.vmem %s19_s26, 896  ;;  %p1087_p6 = scmp.lt.s32.totalorder %s19_s26, %s19_s26 }
  0x11   :  { %p1083_p5 = scmp.ne.s32.totalorder %s19_s26, %s1082_s27  ;;  %p1088_p7 = scmp.lt.s32.totalorder %s1082_s27, %s1082_s27 }
  0x13   :  { %p1089_p8 = por %p1088_p7, %p1087_p6 }
  0x15   :  { %p1090_p9 = pnand %p1089_p8, %p1083_p5 }
  0x17   :  { %1093 = shalt.err (!%p1090_p9)
}
  0x18   :  { %s1144_s28 = smov 448   ;;  %s1145_s29 = smov 28  }
  0x19   :  { %24 = dma.hbm_to_vmem [thread:$0]  %s1206_s0, 896, %s19_s26, [#allocation3], %s1144_s28, %s1144_s28, %s1145_s29  }
  0x1a   :  { %s1146_s7 = smov [#allocation7]  }
  0x1b   :  { %s44_s8 = sshll.u32 %s1146_s7, 4  ;;  %s45_s8 = int_to_ptr.vmem [resolvable:$true] %s44_s8 }
  0x1c   :  { %s1102_s1 = scalar_lea.vmem %s45_s8, 2048  ;;  %p1107_p11 = scmp.lt.s32.totalorder %s45_s8, %s45_s8 }
  0x1d   :  { %p1103_p10 = scmp.ne.s32.totalorder %s45_s8, %s1102_s1  ;;  %p1108_p12 = scmp.lt.s32.totalorder %s1102_s1, %s1102_s1 }
  0x1f   :  { %p1109_p13 = por %p1108_p12, %p1107_p11 }
  0x21   :  { %p1110_p0 = pnand %p1109_p13, %p1103_p10 }
  0x23   :  { %1113 = shalt.err (!%p1110_p0)
}
  0x24   :  { %s1147_s9 = smov 128   ;;  %s1148_s10 = smov 8  }
  0x25   :  { %50 = dma.hbm_to_vmem [thread:$0]  %s1209_s3, 2048, %s45_s8, [#allocation6], %s1147_s9, %s1147_s9, %s1148_s10  }
  0x26   :  { %1134 = dma.done.wait [#allocation3], 896  }
  0x27   :  { %1135 = vsyncadd [#allocation3], 4294966400 }
  0x28   :  { %1136 = dma.done.wait [#allocation6], 8320  }
  0x29   :  { %1137 = vsyncadd [#allocation6], 4294958976  ;;  %v991_v0 = vld [vmem:[#allocation5 + $0x78] sm:$0xff]   ;;  %v995_v4 = vld [vmem:[#allocation5 + $0x70] sm:$0xff]   ;;  %v1149_v38 = vmov 0.0   ;;  %vm1150_vm0 = vmmov 0  }
  0x2a   :  { %v992_v1 = vld [vmem:[#allocation5 + $0x38] sm:$0xff]   ;;  %852 = vmatprep.subr.bf16.mxu0 %v991_v0  ;;  %v996_v5 = vld [vmem:[#allocation5 + $0x30] sm:$0xff]   ;;  %v999_v8 = vld [vmem:[#allocation5 + $0x68] sm:$0xff]   ;;  %vm505_vm1 = vcmask 130048   ;;  %s1151_s14 = smov [#allocation8]  }
  0x2b   :  { %v993_v2 = vld [vmem:[#allocation5 + $0xf8] sm:$0xff]   ;;  %853 = vmatpush3.bf16.msra.mxu0 %v992_v1  ;;  %v997_v6 = vld [vmem:[#allocation5 + $0xf0] sm:$0xff]   ;;  %v1000_v9 = vld [vmem:[#allocation5 + $0x28] sm:$0xff]   ;;  %s780_s15 = sshll.u32 %s1151_s14, 4  ;;  %s781_s15 = int_to_ptr.vmem [resolvable:$true] %s780_s15 }
  0x2c   :  { %v994_v3 = vld [vmem:[#allocation5 + $0xb8] sm:$0xff]   ;;  %874 = vmatprep.subr.bf16.mxu1 %v993_v2  ;;  %854 = vmatprep.subr.bf16.mxu0 %v995_v4  ;;  %v998_v7 = vld [vmem:[#allocation5 + $0xb0] sm:$0xff]   ;;  %v1001_v10 = vld [vmem:[#allocation5 + $0xe8] sm:$0xff]   ;;  %s1114_s16 = scalar_lea.vmem %s781_s15, 256  ;;  %p1119_p2 = scmp.lt.s32.totalorder %s781_s15, %s781_s15 }
  0x2d   :  { %875 = vmatpush3.bf16.msra.mxu1 %v994_v3  ;;  %v1002_v11 = vld [vmem:[#allocation5 + $0xa8] sm:$0xff]   ;;  %v1003_v12 = vld [vmem:[#allocation5 + $0x60] sm:$0xff]   ;;  %v1007_v16 = vld [vmem:[#allocation5 + $0x58] sm:$0xff]   ;;  %p1115_p1 = scmp.ne.s32.totalorder %s781_s15, %s1114_s16  ;;  %p1120_p3 = scmp.lt.s32.totalorder %s1114_s16, %s1114_s16 }
  0x2e   :  { %876 = vmatprep.subr.bf16.mxu1 %v997_v6  ;;  %v1004_v13 = vld [vmem:[#allocation5 + $0x20] sm:$0xff]   ;;  %v1008_v17 = vld [vmem:[#allocation5 + $0x18] sm:$0xff]   ;;  %v1011_v20 = vld [vmem:[#allocation5 + $0x50] sm:$0xff]  }
  0x2f   :  { %855 = vmatpush3.bf16.msra.mxu0 %v996_v5  ;;  %v1005_v14 = vld [vmem:[#allocation5 + $0xe0] sm:$0xff]   ;;  %v1009_v18 = vld [vmem:[#allocation5 + $0xd8] sm:$0xff]   ;;  %v1012_v21 = vld [vmem:[#allocation5 + $0x10] sm:$0xff]   ;;  %p1121_p4 = por %p1120_p3, %p1119_p2 }
  0x30   :  { %856 = vmatprep.subr.bf16.mxu0 %v999_v8  ;;  %v1006_v15 = vld [vmem:[#allocation5 + $0xa0] sm:$0xff]   ;;  %v1010_v19 = vld [vmem:[#allocation5 + $0x98] sm:$0xff]   ;;  %v1013_v22 = vld [vmem:[#allocation5 + $0xd0] sm:$0xff]  }
  0x31   :  { %877 = vmatpush3.bf16.msra.mxu1 %v998_v7  ;;  %v1014_v23 = vld [vmem:[#allocation5 + $0x90] sm:$0xff]   ;;  %v1015_v24 = vld [vmem:[#allocation5 + $0x48] sm:$0xff]   ;;  %v1019_v28 = vld [vmem:[#allocation5 + $0x40] sm:$0xff]   ;;  %p1122_p5 = pnand %p1121_p4, %p1115_p1 }
  0x32   :  { %878 = vmatprep.subr.bf16.mxu1 %v1001_v10  ;;  %v1016_v25 = vld [vmem:[#allocation5 + $0x8] sm:$0xff]   ;;  %v1020_v29 = vld [vmem:[#allocation5] sm:$0xff]   ;;  %v1026_v34 = vld [vmem:[#allocation5 + $0x178] sm:$0xff]  }
  0x33   :  { %857 = vmatpush3.bf16.msra.mxu0 %v1000_v9  ;;  %v1017_v26 = vld [vmem:[#allocation5 + $0xc8] sm:$0xff]   ;;  %v1021_v30 = vld [vmem:[#allocation5 + $0xc0] sm:$0xff]   ;;  %v1029_v36 = vld [vmem:[#allocation2 + $0xc] ss:$28 sps:$4 sm:$0xff]  }
  0x34   :  { %858 = vmatprep.subr.bf16.mxu0 %v1003_v12  ;;  %v1018_v27 = vld [vmem:[#allocation5 + $0x88] sm:$0xff]   ;;  %v1025_v33 = vld [vmem:[#allocation5 + $0x80] sm:$0xff]   ;;  %v1030_v37 = vld [vmem:[#allocation5 + $0x138] sm:$0xff]   ;;  %582 = vmatprep.mubr.bf16.mxu1 %v1029_v36 }
  0x35   :  { %879 = vmatpush3.bf16.msra.mxu1 %v1002_v11  ;;  %v1022_v31 = vld [vmem:[#allocation2] ss:$28 sps:$4 sm:$0xff]   ;;  %v1027_v35 = vld [vmem:[#allocation2 + $0x8] ss:$28 sps:$4 sm:$0xff]   ;;  %v1037_v45 = vld [vmem:[#allocation5 + $0x158] sm:$0xff]  }
  0x36   :  { %880 = vmatprep.subr.bf16.mxu1 %v1005_v14  ;;  %v1024_v32 = vld [vmem:[#allocation2 + $0x4] ss:$28 sps:$4 sm:$0xff]   ;;  %v1031_v39 = vld [vmem:[#allocation5 + $0x170] sm:$0xff]   ;;  %v1035_v43 = vld [vmem:[#allocation5 + $0x160] sm:$0xff]  }
  0x37   :  { %859 = vmatpush3.bf16.msra.mxu0 %v1004_v13  ;;  %541 = vmatprep.mubr.bf16.mxu0 %v1024_v32  ;;  %v1032_v40 = vld [vmem:[#allocation5 + $0x130] sm:$0xff]   ;;  %v1033_v41 = vld [vmem:[#allocation5 + $0x168] sm:$0xff]   ;;  %v1036_v44 = vld [vmem:[#allocation5 + $0x120] sm:$0xff]  }
  0x38   :  { %860 = vmatprep.subr.bf16.mxu0 %v1007_v16  ;;  %v1034_v42 = vld [vmem:[#allocation5 + $0x128] sm:$0xff]   ;;  %v1038_v46 = vld [vmem:[#allocation5 + $0x118] sm:$0xff]   ;;  %v1039_v47 = vld [vmem:[#allocation5 + $0x150] sm:$0xff]  }
  0x39   :  { %881 = vmatpush3.bf16.msra.mxu1 %v1006_v15  ;;  %v1045_v48 = vld [vmem:[#allocation5 + $0x180] sm:$0xff]   ;;  %v1048_v49 = vld [vmem:[#allocation2 + $0x14] ss:$28 sps:$4 sm:$0xff]   ;;  %v1040_v51 = vld [vmem:[#allocation5 + $0x110] sm:$0xff]  }
  0x3a   :  { %882 = vmatprep.subr.bf16.mxu1 %v1009_v18  ;;  %v1049_v50 = vld [vmem:[#allocation2 + $0x18] ss:$28 sps:$4 sm:$0xff]   ;;  %v1041_v52 = vld [vmem:[#allocation5 + $0x148] sm:$0xff]   ;;  %v1046_v56 = vld [vmem:[#allocation2 + $0x10] ss:$28 sps:$4 sm:$0xff]  }
  0x3b   :  { %861 = vmatpush3.bf16.msra.mxu0 %v1008_v17  ;;  %v1042_v53 = vld [vmem:[#allocation5 + $0x108] sm:$0xff]   ;;  %v1043_v54 = vld [vmem:[#allocation5 + $0x140] sm:$0xff]   ;;  %v689_v58 = vld [vmem:[#allocation7 + $0x70] sm:$0xff] }
  0x3c   :  { %862 = vmatprep.subr.bf16.mxu0 %v1011_v20  ;;  %v1044_v55 = vld [vmem:[#allocation5 + $0x100] sm:$0xff]   ;;  %v688_v59 = vld [vmem:[#allocation7 + $0x68] sm:$0xff]  ;;  %v687_v60 = vld [vmem:[#allocation7 + $0x60] sm:$0xff] }
  0x3d   :  { %883 = vmatpush3.bf16.msra.mxu1 %v1010_v19  ;;  %v690_v57 = vld [vmem:[#allocation7 + $0x78] sm:$0xff]  ;;  %v685_v62 = vld [vmem:[#allocation7 + $0x50] sm:$0xff]  ;;  %v684_v63 = vld [vmem:[#allocation7 + $0x48] sm:$0xff] }
  0x3e   :  { %884 = vmatprep.subr.bf16.mxu1 %v1013_v22  ;;  %v686_v61 = vld [vmem:[#allocation7 + $0x58] sm:$0xff]  ;;  %v683_v0 = vld [vmem:[#allocation7 + $0x40] sm:$0xff]  ;;  %v681_v2 = vld [vmem:[#allocation7 + $0x30] sm:$0xff] }
  0x3f   :  { %863 = vmatpush3.bf16.msra.mxu0 %v1012_v21  ;;  %v682_v1 = vld [vmem:[#allocation7 + $0x38] sm:$0xff]  ;;  %v680_v3 = vld [vmem:[#allocation7 + $0x28] sm:$0xff]  ;;  %v679_v4 = vld [vmem:[#allocation7 + $0x20] sm:$0xff] }
  0x40   :  { %864 = vmatprep.subr.bf16.mxu0 %v1015_v24  ;;  %v678_v5 = vld [vmem:[#allocation7 + $0x18] sm:$0xff]  ;;  %v677_v6 = vld [vmem:[#allocation7 + $0x10] sm:$0xff]  ;;  %v676_v7 = vld [vmem:[#allocation7 + $0x8] sm:$0xff] }
  0x41   :  { %885 = vmatpush3.bf16.msra.mxu1 %v1014_v23  ;;  %v675_v8 = vld [vmem:[#allocation7] sm:$0xff] }
  0x42   :  { %886 = vmatprep.subr.bf16.mxu1 %v1017_v26  ;;  %v793_v21 = vld [vmem:[%s1208_s2] ss:$0 sm:$0xff] }
  0x43   :  { %865 = vmatpush3.bf16.msra.mxu0 %v1016_v25 }
  0x44   :  { %866 = vmatprep.subr.bf16.mxu0 %v1019_v28 }
  0x45   :  { %887 = vmatpush3.bf16.msra.mxu1 %v1018_v27 }
  0x46   :  { %888 = vmatprep.subr.bf16.mxu1 %v1021_v30 }
  0x47   :  { %867 = vmatpush3.bf16.msra.mxu0 %v1020_v29 }
  0x48   :  { %896 = vmatprep.subr.bf16.mxu0 %v1026_v34 }
  0x49   :  { %889 = vmatpush3.bf16.msra.mxu1 %v1025_v33 }
  0x4a   :  { %542 = vmatmul.mubr.bf16.vlgmr.msra.gmra.mxu0 %v1022_v31  ;;  %938 = vmatprep.subr.bf16.mxu1 %v1149_v38 }
  0x4b   :  { %897 = vmatpush3.bf16.msra.mxu0 %v1030_v37  ;;  %623 = vmatprep.mubr.bf16.mxu0 %v1048_v49 }
  0x4c   :  { %583 = vmatmul.mubr.bf16.vlgmr.msra.gmra.mxu1 %v1027_v35  ;;  %898 = vmatprep.subr.bf16.mxu0 %v1031_v39 }
  0x4d   :  { %940 = vmatprep.mubr.msk.bf16.mxu1 %vm1150_vm0, %v1149_v38  ;;  %939 = vmatpush3.bf16.msra.mxu1 %v1045_v48 }
  0x4e   :  { %944 = vmatprep.subr.mxu1 %v690_v57 }
  0x4f   :  { %899 = vmatpush3.bf16.msra.mxu0 %v1032_v40 }
  0x50   :  { %900 = vmatprep.subr.bf16.mxu0 %v1033_v41 }
  0x53   :  { %901 = vmatpush3.bf16.msra.mxu0 %v1034_v42  ;;  %v851_v42 = vld [vmem:[%s1210_s4] ss:$0 sm:$0xff] }
  0x54   :  { %902 = vmatprep.subr.bf16.mxu0 %v1035_v43  ;;  %941 = vmatmul.mubr.msk.bf16.vlgmr.msra.gmra.mxu1 %vm505_vm1, %v1049_v50 }
  0x55   :  { %945 = vmatpush3.msra.mxu1 %v690_v57 }
  0x56   :  { %946 = vmatprep.subr.mxu1 %v689_v58 }
  0x57   :  { %903 = vmatpush3.bf16.msra.mxu0 %v1036_v44  ;;  %947 = vmatpush3.msra.mxu1 %v689_v58 }
  0x58   :  { %904 = vmatprep.subr.bf16.mxu0 %v1037_v45  ;;  %948 = vmatprep.subr.mxu1 %v688_v59 }
  0x59   :  { %949 = vmatpush3.msra.mxu1 %v688_v59 }
  0x5a   :  { %950 = vmatprep.subr.mxu1 %v687_v60 }
  0x5b   :  { %905 = vmatpush3.bf16.msra.mxu0 %v1038_v46  ;;  %951 = vmatpush3.msra.mxu1 %v687_v60 }
  0x5c   :  { %906 = vmatprep.subr.bf16.mxu0 %v1039_v47  ;;  %952 = vmatprep.subr.mxu1 %v686_v61 }
  0x5d   :  { %953 = vmatpush3.msra.mxu1 %v686_v61 }
  0x5e   :  { %954 = vmatprep.subr.mxu1 %v685_v62 }
  0x5f   :  { %907 = vmatpush3.bf16.msra.mxu0 %v1040_v51  ;;  %955 = vmatpush3.msra.mxu1 %v685_v62 }
  0x60   :  { %908 = vmatprep.subr.bf16.mxu0 %v1041_v52  ;;  %956 = vmatprep.subr.mxu1 %v684_v63 }
  0x61   :  { %957 = vmatpush3.msra.mxu1 %v684_v63 }
  0x62   :  { %958 = vmatprep.subr.mxu1 %v683_v0 }
  0x63   :  { %909 = vmatpush3.bf16.msra.mxu0 %v1042_v53  ;;  %959 = vmatpush3.msra.mxu1 %v683_v0 }
  0x64   :  { %910 = vmatprep.subr.bf16.mxu0 %v1043_v54  ;;  %960 = vmatprep.subr.mxu1 %v682_v1 }
  0x65   :  { %961 = vmatpush3.msra.mxu1 %v682_v1 }
  0x66   :  { %962 = vmatprep.subr.mxu1 %v681_v2 }
  0x67   :  { %911 = vmatpush3.bf16.msra.mxu0 %v1044_v55  ;;  %963 = vmatpush3.msra.mxu1 %v681_v2 }
  0x68   :  { %964 = vmatprep.subr.mxu1 %v680_v3 }
  0x69   :  { %965 = vmatpush3.msra.mxu1 %v680_v3 }
  0x6a   :  { %624 = vmatmul.mubr.bf16.vlgmr.msra.gmra.mxu0 %v1046_v56  ;;  %966 = vmatprep.subr.mxu1 %v679_v4 }
  0x6b   :  { %967 = vmatpush3.msra.mxu1 %v679_v4 }
  0x6c   :  { %968 = vmatprep.subr.mxu1 %v678_v5 }
  0x6d   :  { %969 = vmatpush3.msra.mxu1 %v678_v5 }
  0x6e   :  { %970 = vmatprep.subr.mxu1 %v677_v6 }
  0x6f   :  { %971 = vmatpush3.msra.mxu1 %v677_v6 }
  0x70   :  { %972 = vmatprep.subr.mxu1 %v676_v7 }
  0x71   :  { %973 = vmatpush3.msra.mxu1 %v676_v7 }
  0x72   :  { %974 = vmatprep.subr.mxu1 %v675_v8 }
  0x73   :  { %975 = vmatpush3.msra.mxu1 %v675_v8 }
 0x10a   :  { %v868_v12 = vpop.f32.mrf.mxu0 }
 0x10c   :  { %v890_v9 = vpop.f32.mrf.mxu1  ;;  %v869_v15 = vpop.f32.mrf.mxu0 }
 0x10d   :  { %v870_v20 = vadd.f32 %v869_v15, %v868_v12 }
 0x10e   :  { %v891_v10 = vpop.f32.mrf.mxu1  ;;  %v871_v18 = vpop.f32.mrf.mxu0 }
 0x10f   :  { %v544_v23 = vadd.f32 %v870_v20, %v793_v21  ;;  %v892_v24 = vadd.f32 %v891_v10, %v890_v9 }
 0x110   :  { %v893_v11 = vpop.f32.mrf.mxu1  ;;  %v872_v22 = vpop.f32.mrf.mxu0 }
 0x111   :  { %v873_v25 = vadd.f32 %v872_v22, %v871_v18  ;;  %v585_v28 = vadd.f32 %v892_v24, %v544_v23 }
 0x112   :  { %v894_v13 = vpop.f32.mrf.mxu1 }
 0x113   :  { %v547_v29 = vadd.f32 %v873_v25, %v793_v21  ;;  %v895_v30 = vadd.f32 %v894_v13, %v893_v11 }
 0x114   :  { %v666_v14 = vpop.f32.mrf.mxu1 }
 0x115   :  { %v588_v35 = vadd.f32 %v895_v30, %v547_v29 }
 0x116   :  { %v942_v16 = vpop.f32.mrf.mxu1 }
 0x118   :  { %v669_v17 = vpop.f32.mrf.mxu1 }
 0x11a   :  { %v943_v19 = vpop.f32.mrf.mxu1 }
 0x12a   :  { %v912_v26 = vpop.f32.mrf.mxu0 }
 0x12c   :  { %v913_v27 = vpop.f32.mrf.mxu0 }
 0x12d   :  { %v914_v31 = vadd.f32 %v913_v27, %v912_v26 }
 0x12e   :  { %v915_v32 = vpop.f32.mrf.mxu0 }
 0x12f   :  { %v626_v33 = vadd.f32 %v914_v31, %v585_v28 }
 0x130   :  { %v916_v34 = vpop.f32.mrf.mxu0 }
 0x131   :  { %v667_v36 = vadd.f32 %v666_v14, %v626_v33  ;;  %v917_v37 = vadd.f32 %v916_v34, %v915_v32 }
 0x133   :  { %1050 = vtanh.f32 %v667_v36  ;;  %v629_v38 = vadd.f32 %v917_v37, %v588_v35 }
 0x135   :  { %v670_v39 = vadd.f32 %v669_v17, %v629_v38 }
 0x137   :  { %1052 = vtanh.f32 %v670_v39 }
 0x140   :  { %v1051_v40 = vpop.eup %1050 }
 0x141   :  { %976 = vmatprep.mubr.f32.mxu1 %v1051_v40 }
 0x144   :  { %v1053_v41 = vpop.eup %1052 }
 0x145   :  { %977 = vmatmul.mubr.f32.vlgmr.msra.gmra.mxu1 %v1053_v41 }
 0x205   :  { %v978_v43 = vpop.f32.mrf.mxu1 }
 0x206   :  { %v770_v44 = vadd.f32 %v978_v43, %v851_v42 }
 0x207   :  { %v764_v45 = vpop.f32.mrf.mxu1 }
 0x208   :  { %774 = vst [vmem:[#allocation8 + $0x8] sm:$0xff] %v770_v44  ;;  %v765_v46 = vadd.f32 %v851_v42, %v764_v45 }
 0x20a   :  { %773 = vst [vmem:[#allocation8] sm:$0xff] %v765_v46 }
 0x20b   :  { %1125 = shalt.err (!%p1122_p5)
}
 0x20c   :  { %786 = dma.vmem_to_hbm [thread:$0]  %s781_s15, 256, %s1211_s5, [#allocation4], %s1147_s9, %s1147_s9, %s1148_s10  }
 0x20d   :  { %1138 = dma.done.wait [#allocation4], 256  }
 0x20e   :  { %1139 = vsyncadd [#allocation4], 4294967040 }
 0x20f   :  { %790 = vsyncpa [#allocation3], 1 }
 0x210   :  { %791 = vsyncpa [#allocation6], 1 }
 0x211   :  { %792 = vsyncpa [#allocation4], 1 }

</bundles_post_ra>
